<compile_context>
chip_gen: v7x
topology: tpu7x:2x2x1
jax: 0.10.0
libtpu: 0.0.40
codegen_flags: <defaults>
</compile_context>

<pallas_src>
import functools

import numpy as np
import jax
import jax.numpy as jnp
from jax.experimental import pallas as pl
from jax.experimental.pallas import tpu as pltpu


def _round_up(x, m):
    return ((x + m - 1) // m) * m


def _cdiv(a, b):
    return -(-a // b)


@functools.lru_cache(maxsize=None)
def _make_moving_avg_operator_np(L, k=5):
    """(L, L) matrix A with (x @ A)[:, t] == replicate-padded moving average at t."""
    pad = (k - 1) // 2
    A = np.zeros((L, L), np.float32)
    for t in range(L):
        for j in range(k):
            s = min(max(t + j - pad, 0), L - 1)
            A[s, t] += 1.0 / k
    return A


# ----------------------------------------------------------------------------
# Pallas kernel: one row-tile of the fully-folded forward.
#   x : (TILE_N, L)        input rows (batch*channel major), bf16 or f32
#   w : (L, 3*Ppad)        folded [mu | seasonal | sigma] weights (lane-padded)
#   b : (1, 3*Ppad)        folded biases (f32)
#   o : (TILE_N, P)        mu + seasonal * (sigma + eps), f32, un-padded last dim
# ----------------------------------------------------------------------------
def _otpts_kernel(x_ref, w_ref, b_ref, o_ref, *, eps, p_pad, p):
    x = x_ref[...]

    def head(h):
        # 128-aligned static Ref slices: free views, no (tn, 3*Ppad) temp.
        y = jnp.dot(x, w_ref[:, h * p_pad:(h + 1) * p_pad],
                    preferred_element_type=jnp.float32)
        return y + b_ref[:, h * p_pad:(h + 1) * p_pad]

    mu = head(0)
    se = head(1)
    sg = head(2)
    # Store only the first P lanes (masked vst) -> no padded HBM writeback.
    o_ref[...] = (mu + se * (sg + eps))[:, :p]


def prepare_params(params, *, seq_len, pred_len, compute_dtype=jnp.bfloat16):
    """One-time fold of series_decomp + sigma_proj + the three Linear heads.

    Fold is done in f32; only the final streamed weight is cast to `compute_dtype`
    (default bf16: half the HBM bytes + bf16 MXU rate; accumulation stays f32).
    Returns W: (L, 3*Ppad) compute_dtype, b: (1, 3*Ppad) f32.
    """
    L, P = seq_len, pred_len
    p_pad = _round_up(max(P, 1), 128)

    A = jnp.asarray(_make_moving_avg_operator_np(L, 5))       # trend_mu = x @ A
    R = jnp.eye(L, dtype=jnp.float32) - A                     # res      = x @ R

    wmu = A @ params["w_mu"].T                                 # (L, P)
    wse = R @ params["w_se"].T                                 # (L, P)
    wsg = R @ params["w_sigma"].T @ params["w_sg"].T           # (L, P)
    bmu = params["b_mu"]                                       # (P,)
    bse = params["b_se"]
    bsg = params["b_sigma"] @ params["w_sg"].T + params["b_sg"]

    def pw(w):
        return jnp.pad(w, ((0, 0), (0, p_pad - P)))

    def pb(b):
        return jnp.pad(b, (0, p_pad - P))

    W = jnp.concatenate([pw(wmu), pw(wse), pw(wsg)], axis=1).astype(compute_dtype)
    b = jnp.concatenate([pb(bmu), pb(bse), pb(bsg)])[None, :].astype(jnp.float32)
    return W, b


def _pick_tiling(N, L, P, p_pad, in_itemsize, tile_n, vmem_budget):
    """Balanced row tiles under an explicit VMEM budget; >=2 grid steps when N allows."""
    def est(tn):
        return (2 * tn * L * in_itemsize            # double-buffered x tiles
                + 2 * tn * P * 4                    # double-buffered out tiles (f32)
                + 2 * L * 3 * p_pad * in_itemsize   # folded W (conservatively 2 bufs)
                + 2 * 3 * p_pad * 4                 # folded bias
                + 4 * tn * p_pad * 4)               # per-head f32 temps in the body

    tn_cap = max(8, _round_up(tile_n, 8))
    while tn_cap > 8 and est(tn_cap) > vmem_budget:
        tn_cap = max(8, _round_up(tn_cap // 2, 8))

    n_tiles = max(_cdiv(N, tn_cap), 1)
    if n_tiles < 2 and N >= 16:
        n_tiles = 2                                  # v7x: keep both TensorCores busy
    tn = _round_up(_cdiv(N, n_tiles), 8)             # balanced: < 8 padded rows per tile
    grid = _cdiv(N, tn)
    return tn, grid, grid * tn, est(tn)


@functools.partial(jax.jit, static_argnames=("pred_len", "eps", "tile_n"))
def otpts_forward(x_obs, w_folded, b_folded, *, pred_len, eps=1e-5, tile_n=1024):
    """x_obs: (B, L, C) -> (B, pred_len, C); w_folded/b_folded from prepare_params.

    Note: eps is a static jit arg (changing it at runtime recompiles).
    """
    B, L, C = x_obs.shape
    P = pred_len
    p_pad = w_folded.shape[1] // 3
    N = B * C

    # glue: channel-major layout, flatten batch*channel rows, match compute dtype.
    # (Kept: channel-major kernel feeding only pays off for C >= 128 per tile.)
    x2 = jnp.transpose(x_obs, (0, 2, 1)).reshape(N, L).astype(w_folded.dtype)

    in_itemsize = jnp.dtype(w_folded.dtype).itemsize
    vmem_budget = 36 * 1024 * 1024                   # fits v7x (64 MiB) with headroom
    tn, grid, n_pad, vmem_est = _pick_tiling(N, L, P, p_pad, in_itemsize,
                                             tile_n, vmem_budget)
    if n_pad != N:
        x2 = jnp.pad(x2, ((0, n_pad - N), (0, 0)))

    vmem_limit = int(min(max(int(vmem_est * 1.5) + (4 << 20), 32 << 20), 60 << 20))

    kernel = functools.partial(_otpts_kernel, eps=eps, p_pad=p_pad, p=P)
    out = pl.pallas_call(
        kernel,
        out_shape=jax.ShapeDtypeStruct((n_pad, P), jnp.float32),
        grid=(grid,),
        in_specs=[
            pl.BlockSpec((tn, L), lambda i: (i, 0)),           # streamed row tiles
            pl.BlockSpec((L, 3 * p_pad), lambda i: (0, 0)),    # resident folded weights
            pl.BlockSpec((1, 3 * p_pad), lambda i: (0, 0)),    # resident folded biases
        ],
        out_specs=pl.BlockSpec((tn, P), lambda i: (i, 0)),     # un-padded output writes
        compiler_params=pltpu.CompilerParams(
            dimension_semantics=("parallel",),
            vmem_limit_bytes=vmem_limit),
    )(x2, w_folded, b_folded)

    # glue: drop row padding, (N, P) -> (B, C, P) -> (B, P, C).  The PyTorch forward's
    # final [:, -pred_len:, :] slice is a no-op (time dim is already P).
    out = out[:N]
    return jnp.transpose(out.reshape(B, C, P), (0, 2, 1))


def otpts_reference(x_obs, params, *, pred_len, eps=1e-5):
    """Pure-JAX reference mirroring the PyTorch forward (unfolded), for verification."""
    B, L, C = x_obs.shape
    k, pad = 5, 2
    front = jnp.repeat(x_obs[:, :1, :], pad, axis=1)
    end = jnp.repeat(x_obs[:, -1:, :], pad, axis=1)
    xp = jnp.concatenate([front, x_obs, end], axis=1)          # (B, L+4, C)
    trend_mu = sum(xp[:, i:i + L, :] for i in range(k)) / k    # (B, L, C)
    res = x_obs - trend_mu                                      # (seasonal_init override)

    res_p = jnp.transpose(res, (0, 2, 1))                       # (B, C, L)
    mu_p = jnp.transpose(trend_mu, (0, 2, 1))
    sigma_p = res_p @ params["w_sigma"].T + params["b_sigma"]   # (B, C, L)

    mu_out = mu_p @ params["w_mu"].T + params["b_mu"]           # (B, C, P)
    sg_out = sigma_p @ params["w_sg"].T + params["b_sg"]
    se_out = res_p @ params["w_se"].T + params["b_se"]
    out = mu_out + se_out * (sg_out + eps)
    return jnp.transpose(out, (0, 2, 1))


def init_params(key, seq_len, pred_len):
    """Deterministic parameter init matching the module's shapes / special inits."""
    L, P = seq_len, pred_len
    k_sigw, k_sigb, k_bmu, k_bsg, k_bse = jax.random.split(key, 5)
    bound_L = 1.0 / np.sqrt(L)
    return {
        # series_decomp_trend.sigma_proj = nn.Linear(L, L): default init
        "w_sigma": jax.random.uniform(k_sigw, (L, L), jnp.float32, -bound_L, bound_L),
        "b_sigma": jax.random.uniform(k_sigb, (L,), jnp.float32, -bound_L, bound_L),
        # Linear_Trend_Mu / Sigma / Seasonal: weight = (1/seq_len) * ones([P, L])
        "w_mu": jnp.full((P, L), 1.0 / L, jnp.float32),
        "w_sg": jnp.full((P, L), 1.0 / L, jnp.float32),
        "w_se": jnp.full((P, L), 1.0 / L, jnp.float32),
        # biases keep their default nn.Linear init (deterministic here via PRNG)
        "b_mu": jax.random.uniform(k_bmu, (P,), jnp.float32, -bound_L, bound_L),
        "b_sg": jax.random.uniform(k_bsg, (P,), jnp.float32, -bound_L, bound_L),
        "b_se": jax.random.uniform(k_bse, (P,), jnp.float32, -bound_L, bound_L),
    }


if __name__ == "__main__":
    B, L, C, P = 2, 16, 4, 8   # batch, seq_len, enc_in, pred_len
    EPS = 1e-5

    key = jax.random.PRNGKey(0)
    k_x, k_p = jax.random.split(key)
    x_obs = jax.random.normal(k_x, (B, L, C), jnp.float32)
    # x_tim / x_dec / y_tim / mask are unused by the long_term_forecast path.
    params = init_params(k_p, L, P)

    ref = jax.block_until_ready(otpts_reference(x_obs, params, pred_len=P, eps=EPS))

    # f32 kernel run: tight check that the algebraic fold matches the module forward.
    W32, b32 = prepare_params(params, seq_len=L, pred_len=P, compute_dtype=jnp.float32)
    out32 = jax.block_until_ready(otpts_forward(x_obs, W32, b32, pred_len=P, eps=EPS))
    assert out32.shape == (B, P, C), out32.shape
    np.testing.assert_allclose(np.asarray(out32), np.asarray(ref), rtol=2e-5, atol=2e-5)

    # bf16 production path (default compute dtype): half the HBM bytes, f32 accumulate.
    Wbf, bbf = prepare_params(params, seq_len=L, pred_len=P, compute_dtype=jnp.bfloat16)
    outbf = jax.block_until_ready(otpts_forward(x_obs, Wbf, bbf, pred_len=P, eps=EPS))
    assert outbf.shape == (B, P, C), outbf.shape
    np.testing.assert_allclose(np.asarray(outbf), np.asarray(ref), rtol=3e-2, atol=3e-2)

    print("KERNEL_OK")
</pallas_src>

<mosaic_0001>
module attributes {stable_mosaic.version = 11 : i64} {
  func.func @_otpts_kernel(%arg0: i32, %arg1: memref<8x16xf32, #tpu.memory_space<vmem>>, %arg2: memref<16x384xf32, #tpu.memory_space<vmem>>, %arg3: memref<1x384xf32, #tpu.memory_space<vmem>>, %arg4: memref<8x8xf32, #tpu.memory_space<vmem>>) attributes {dimension_semantics = [#tpu.dimension_semantics<parallel>], iteration_bounds = array<i64: 1>, scalar_prefetch = 0 : i64, scratch_operands = 0 : i64, tpu.core_type = #tpu.core_type<tc>, window_params = [{transform_indices = @transform_0, window_bounds = array<i64: 8, 16>}, {pipeline_mode = #tpu.pipeline_mode<synchronous>, transform_indices = @transform_1, window_bounds = array<i64: 16, 384>}, {pipeline_mode = #tpu.pipeline_mode<synchronous>, transform_indices = @transform_2, window_bounds = array<i64: 1, 384>}, {transform_indices = @transform_3, window_bounds = array<i64: 8, 8>}]} {
    %c0 = arith.constant 0 : index
    %c0_0 = arith.constant 0 : index
    %0 = vector.load %arg1[%c0, %c0_0] : memref<8x16xf32, #tpu.memory_space<vmem>>, vector<8x16xf32>
    %c0_1 = arith.constant 0 : index
    %c0_2 = arith.constant 0 : index
    %1 = vector.load %arg2[%c0_1, %c0_2] : memref<16x384xf32, #tpu.memory_space<vmem>>, vector<16x128xf32>
    %cst = arith.constant dense<0.000000e+00> : vector<8x128xf32>
    %2 = tpu.matmul %0, %1, %cst {dimension_numbers = #tpu.dot_dimension_numbers<[1], [0], [0], [1], [0, 0, 1, 1], [], []>} : vector<8x16xf32>, vector<16x128xf32>, vector<8x128xf32> -> vector<8x128xf32>
    %c0_3 = arith.constant 0 : index
    %c0_4 = arith.constant 0 : index
    %3 = vector.load %arg3[%c0_3, %c0_4] : memref<1x384xf32, #tpu.memory_space<vmem>>, vector<1x128xf32>
    %4 = vector.broadcast %3 : vector<1x128xf32> to vector<8x128xf32>
    %5 = arith.addf %2, %4 : vector<8x128xf32>
    %c0_5 = arith.constant 0 : index
    %c128 = arith.constant 128 : index
    %6 = vector.load %arg2[%c0_5, %c128] : memref<16x384xf32, #tpu.memory_space<vmem>>, vector<16x128xf32>
    %cst_6 = arith.constant dense<0.000000e+00> : vector<8x128xf32>
    %7 = tpu.matmul %0, %6, %cst_6 {dimension_numbers = #tpu.dot_dimension_numbers<[1], [0], [0], [1], [0, 0, 1, 1], [], []>} : vector<8x16xf32>, vector<16x128xf32>, vector<8x128xf32> -> vector<8x128xf32>
    %c0_7 = arith.constant 0 : index
    %c128_8 = arith.constant 128 : index
    %8 = vector.load %arg3[%c0_7, %c128_8] : memref<1x384xf32, #tpu.memory_space<vmem>>, vector<1x128xf32>
    %9 = vector.broadcast %8 : vector<1x128xf32> to vector<8x128xf32>
    %10 = arith.addf %7, %9 : vector<8x128xf32>
    %c0_9 = arith.constant 0 : index
    %c256 = arith.constant 256 : index
    %11 = vector.load %arg2[%c0_9, %c256] : memref<16x384xf32, #tpu.memory_space<vmem>>, vector<16x128xf32>
    %cst_10 = arith.constant dense<0.000000e+00> : vector<8x128xf32>
    %12 = tpu.matmul %0, %11, %cst_10 {dimension_numbers = #tpu.dot_dimension_numbers<[1], [0], [0], [1], [0, 0, 1, 1], [], []>} : vector<8x16xf32>, vector<16x128xf32>, vector<8x128xf32> -> vector<8x128xf32>
    %c0_11 = arith.constant 0 : index
    %c256_12 = arith.constant 256 : index
    %13 = vector.load %arg3[%c0_11, %c256_12] : memref<1x384xf32, #tpu.memory_space<vmem>>, vector<1x128xf32>
    %14 = vector.broadcast %13 : vector<1x128xf32> to vector<8x128xf32>
    %15 = arith.addf %12, %14 : vector<8x128xf32>
    %cst_13 = arith.constant 9.99999974E-6 : f32
    %16 = vector.broadcast %cst_13 : f32 to vector<8x128xf32>
    %17 = arith.addf %15, %16 : vector<8x128xf32>
    %18 = arith.mulf %10, %17 : vector<8x128xf32>
    %19 = arith.addf %5, %18 : vector<8x128xf32>
    %20 = vector.extract_strided_slice %19 {offsets = [0, 0], sizes = [8, 8], strides = [1, 1]} : vector<8x128xf32> to vector<8x8xf32>
    %c0_14 = arith.constant 0 : index
    %c0_15 = arith.constant 0 : index
    %21 = vector.load %arg4[%c0_14, %c0_15] : memref<8x8xf32, #tpu.memory_space<vmem>>, vector<8x8xf32>
    tpu.vector_store %arg4[%c0_14, %c0_15], %20 {strides = array<i32>} : memref<8x8xf32, #tpu.memory_space<vmem>>, vector<8x8xf32>,
    return
  }
  func.func @transform_0(%arg0: i32) -> (i32, i32) {
    %c0_i32 = arith.constant 0 : i32
    %c0_i32_0 = arith.constant 0 : i32
    return %arg0, %c0_i32 : i32, i32
  }
  func.func @transform_1(%arg0: i32) -> (i32, i32) {
    %c0_i32 = arith.constant 0 : i32
    %c0_i32_0 = arith.constant 0 : i32
    %c0_i32_1 = arith.constant 0 : i32
    return %c0_i32, %c0_i32_0 : i32, i32
  }
  func.func @transform_2(%arg0: i32) -> (i32, i32) {
    %c0_i32 = arith.constant 0 : i32
    %c0_i32_0 = arith.constant 0 : i32
    %c0_i32_1 = arith.constant 0 : i32
    return %c0_i32, %c0_i32_0 : i32, i32
  }
  func.func @transform_3(%arg0: i32) -> (i32, i32) {
    %c0_i32 = arith.constant 0 : i32
    %c0_i32_0 = arith.constant 0 : i32
    return %arg0, %c0_i32 : i32, i32
  }
}

</mosaic_0001>

<bundles_post_ra>
// kernel: otpts_forward.1
= control target key start
LH: loop header
LB: loop body
LE: loop exit
PB: predicated region body
PF: predicated region fallthrough
CT: control target
= control target key end

     0   :  { %8 = vsyncpa [#allocation3], 0  ;;  %s512_s0 = inlined_call_operand.hbm [shape: f32[8,16], index: 0, kind: input, shape index: {}]   ;;  %s513_s1 = inlined_call_operand.hbm [shape: f32[16,384], index: 1, kind: input, shape index: {}]   ;;  %s514_s2 = inlined_call_operand.vmem [shape: f32[1,384], index: 2, kind: input, shape index: {}]   ;;  %s515_s3 = inlined_call_operand.hbm [shape: f32[8,8], index: 3, kind: output, shape index: {}]  }
   0x1   :  { %9 = vsyncpa [#allocation6], 0 }
   0x2   :  { %10 = vsyncpa [#allocation4], 0  ;;  %s429_s12 = smov [#allocation2]   ;;  %s430_s14 = smov [#allocation5]  }
   0x3   :  { %s17_s13 = sshll.u32 %s429_s12, 4  ;;  %s26_s15 = sshll.u32 %s430_s14, 4  ;;  %s18_s13 = int_to_ptr.vmem [resolvable:$true] %s17_s13  ;;  %s457_s15 = int_to_ptr.vmem [resolvable:$true] %s26_s15 }
   0x4   :  { %s357_s18 = scalar_lea.hbm %s512_s0, 128 }
   0x5   :  { %p358_p0 = scmp.ne.s32.totalorder %s512_s0, %s357_s18  ;;  %p361_p1 = scmp.lt.u32.totalorder %s357_s18, %s512_s0 }
   0x7   :  { %p363_p2 = pnand %p361_p1, %p358_p0 }
   0x9   :  { %366 = shalt.err (!%p363_p2)
}
   0xa   :  { %s367_s23 = scalar_lea.vmem %s18_s13, 128  ;;  %p372_p4 = scmp.lt.s32.totalorder %s18_s13, %s18_s13 }
   0xb   :  { %p368_p3 = scmp.ne.s32.totalorder %s18_s13, %s367_s23  ;;  %p373_p5 = scmp.lt.s32.totalorder %s367_s23, %s367_s23 }
   0xd   :  { %p374_p6 = por %p373_p5, %p372_p4 }
   0xf   :  { %p375_p7 = pnand %p374_p6, %p368_p3 }
  0x11   :  { %378 = shalt.err (!%p375_p7)
}
  0x12   :  { %20 = dma.hbm_to_vmem [thread:$0]  %s512_s0, 128, %s18_s13, [#allocation3]  }
  0x13   :  { %s379_s28 = scalar_lea.hbm %s513_s1, 768 }
  0x14   :  { %p380_p8 = scmp.ne.s32.totalorder %s513_s1, %s379_s28  ;;  %p383_p9 = scmp.lt.u32.totalorder %s379_s28, %s513_s1 }
  0x16   :  { %p385_p10 = pnand %p383_p9, %p380_p8 }
  0x18   :  { %388 = shalt.err (!%p385_p10)
}
  0x19   :  { %s389_s6 = scalar_lea.vmem %s457_s15, 768  ;;  %p394_p12 = scmp.lt.s32.totalorder %s457_s15, %s457_s15 }
  0x1a   :  { %p390_p11 = scmp.ne.s32.totalorder %s457_s15, %s389_s6  ;;  %p395_p13 = scmp.lt.s32.totalorder %s389_s6, %s389_s6 }
  0x1c   :  { %p396_p0 = por %p395_p13, %p394_p12 }
  0x1e   :  { %p397_p1 = pnand %p396_p0, %p390_p11 }
  0x20   :  { %400 = shalt.err (!%p397_p1)
}
  0x21   :  { %s431_s0 = smov 384   ;;  %s432_s7 = smov 24  }
  0x22   :  { %32 = dma.hbm_to_vmem [thread:$0]  %s513_s1, 768, %s457_s15, [#allocation6], %s431_s0, %s431_s0, %s432_s7  }
  0x23   :  { %423 = dma.done.wait [#allocation3], 128  }
  0x24   :  { %424 = vsyncadd [#allocation3], 4294967168 }
  0x25   :  { %425 = dma.done.wait [#allocation6], 768  }
  0x26   :  { %426 = vsyncadd [#allocation6], 4294966528  ;;  %v433_v0 = vmov 0.0|0.0   ;;  %vm434_vm0 = vmmov 0   ;;  %v435_v1 = vmov 0.0   ;;  %v42_v2 = vld [vmem:[#allocation5] sm:$0xff] }
  0x27   :  { %340 = vmatprep.subr.bf16.mxu0 %v433_v0  ;;  %323 = vmatprep.mubr.msk.f32.mxu0 %vm434_vm0, %v435_v1  ;;  %v43_v3 = vld [vmem:[#allocation5 + $0x18] sm:$0xff]  ;;  %v204_v5 = vld [vmem:[#allocation5 + $0x10] sm:$0xff]  ;;  %v205_v6 = vld [vmem:[#allocation5 + $0x28] sm:$0xff]  ;;  %vm51_vm1 = vcmask 130048   ;;  %s436_s15 = smov [#allocation7]   ;;  %vm286_vm2 = vcmask 64512  }
  0x28   :  { %343 = vmatprep.subr.bf16.mxu1 %v433_v0  ;;  %330 = vmatprep.mubr.msk.f32.mxu1 %vm434_vm0, %v435_v1  ;;  %v341_v4 = vpack.c.bf16 %v43_v3, %v42_v2  ;;  %v125_v7 = vld [vmem:[#allocation5 + $0x8] sm:$0xff]  ;;  %v126_v8 = vld [vmem:[#allocation5 + $0x20] sm:$0xff]  ;;  %v41_v9 = vld [vmem:[#allocation2] sm:$0xff]  ;;  %v347_v10 = vpack.c.bf16 %v205_v6, %v204_v5  ;;  %s294_s16 = sshll.u32 %s436_s15, 4  ;;  %s295_s16 = int_to_ptr.vmem [resolvable:$true] %s294_s16 }
  0x29   :  { %v344_v11 = vpack.c.bf16 %v126_v8, %v125_v7  ;;  %v308_v14 = vld [vmem:[%s514_s2 + $0x2] ss:$0 sm:$0xff]  ;;  %v306_v15 = vld [vmem:[%s514_s2 + $0x1] ss:$0 sm:$0xff]  ;;  %v304_v22 = vld [vmem:[%s514_s2] ss:$0 sm:$0xff]  ;;  %p406_p3 = scmp.lt.s32.totalorder %s295_s16, %s295_s16 }
  0x2a   :  { %342 = vmatpush3.bf16.msra.mxu0 %v341_v4  ;;  %s401_s17 = scalar_lea.vmem %s295_s16, 128 }
  0x2b   :  { %346 = vmatprep.subr.bf16.mxu0 %v433_v0  ;;  %345 = vmatpush3.bf16.msra.mxu1 %v344_v11  ;;  %p402_p2 = scmp.ne.s32.totalorder %s295_s16, %s401_s17  ;;  %p407_p4 = scmp.lt.s32.totalorder %s401_s17, %s401_s17 }
  0x2d   :  { %324 = vmatmul.mubr.msk.f32.vlgmr.msra.gmra.mrb[0].mxu0 %vm51_vm1, %v41_v9  ;;  %p408_p5 = por %p407_p4, %p406_p3 }
  0x2e   :  { %348 = vmatpush3.bf16.msra.mxu0 %v347_v10  ;;  %337 = vmatprep.mubr.msk.f32.mxu0 %vm434_vm0, %v435_v1 }
  0x2f   :  { %331 = vmatmul.mubr.msk.f32.vlgmr.msra.gmra.mrb[0].mxu1 %vm51_vm1, %v41_v9  ;;  %p409_p6 = pnand %p408_p5, %p402_p2 }
  0x31   :  { %338 = vmatmul.mubr.msk.f32.vlgmr.msra.gmra.mrb[2].mxu0 %vm51_vm1, %v41_v9 }
 0x100   :  { %v121_v12 = vpop.f32.mrb[0].mxu0 }
 0x101   :  { %v325_v13 = vpop.f32.mrb[1].mxu0  ;;  %v122_v24 = vadd.f32 %v304_v22, %v121_v12 }
 0x102   :  { %v200_v16 = vpop.f32.mrb[0].mxu1 }
 0x103   :  { %v332_v17 = vpop.f32.mrb[1].mxu1  ;;  %v201_v21 = vadd.f32 %v306_v15, %v200_v16 }
 0x104   :  { %v279_v18 = vpop.f32.mrb[2].mxu0 }
 0x105   :  { %v280_v19 = vadd.f32 %v308_v14, %v279_v18  ;;  %v339_v20 = vpop.f32.mrb[3].mxu0 }
 0x107   :  { %v283_v23 = vadd.f32 1e-05, %v280_v19 }
 0x109   :  { %v284_v25 = vmul.f32 %v283_v23, %v201_v21 }
 0x10b   :  { %v285_v26 = vadd.f32 %v284_v25, %v122_v24 }
 0x10d   :  { %287 = vst.msk [vmem:[#allocation7] sm:$0xff] %vm286_vm2, %v285_v26 }
 0x10e   :  { %412 = shalt.err (!%p409_p6)
}
 0x10f   :  { %s413_s2 = scalar_lea.hbm %s515_s3, 128 }
 0x110   :  { %p414_p7 = scmp.ne.s32.totalorder %s515_s3, %s413_s2  ;;  %p417_p8 = scmp.lt.u32.totalorder %s413_s2, %s515_s3 }
 0x112   :  { %p419_p9 = pnand %p417_p8, %p414_p7 }
 0x114   :  { %422 = shalt.err (!%p419_p9)
}
 0x115   :  { %297 = dma.vmem_to_hbm [thread:$0]  %s295_s16, 128, %s515_s3, [#allocation4]  }
 0x116   :  { %427 = dma.done.wait [#allocation4], 128  }
 0x117   :  { %428 = vsyncadd [#allocation4], 4294967168 }
 0x118   :  { %301 = vsyncpa [#allocation3], 1 }
 0x119   :  { %302 = vsyncpa [#allocation6], 1 }
 0x11a   :  { %303 = vsyncpa [#allocation4], 1 }

</bundles_post_ra>
